<compile_context>
chip_gen: v7x
topology: tpu7x:2x2x1
jax: 0.10.0
libtpu: 0.0.40
codegen_flags: <defaults>
</compile_context>

<pallas_src>
import jax
import jax.numpy as jnp
from jax.experimental import pallas as pl
from jax.experimental.pallas import tpu as pltpu


# --------------------------------------------------------------------------- #
# Pass 1: conv (single im2col matmul) + embed add + per-channel GN stats
# --------------------------------------------------------------------------- #
def _conv_embed_stats_kernel(x_ref, w_ref, emb_ref, hpre_ref, sum_ref, sq_ref):
    # x_ref  : (1, T_ho, Wo, Kc)     im2col row tile (streamed per grid step)
    # w_ref  : (Kc, C_out)           resident conv weights
    # emb_ref: (1, 1, C_out)         per-batch Dense(embed) projection (f32)
    # hpre   : (1, T_ho, Wo, C_out)  pre-norm activations (bf16 by default)
    # sum/sq : (1, 1, 1, C_out)      per-channel stats, resident across inner axis
    @pl.when(pl.program_id(2) == 0)
    def _init():
        sum_ref[...] = jnp.zeros_like(sum_ref)
        sq_ref[...] = jnp.zeros_like(sq_ref)

    _, t_ho, wo, kc = x_ref.shape
    c_out = w_ref.shape[1]

    xs = x_ref[...].reshape(t_ho * wo, kc)
    # Single MXU matmul, f32 accumulation.
    acc = jnp.dot(xs, w_ref[...], preferred_element_type=jnp.float32)
    acc = acc + emb_ref[0].astype(jnp.float32)          # (1, C_out) broadcast

    # GroupNorm phase 1: per-channel sum / sum-of-squares in f32.
    sum_ref[...] += jnp.sum(acc, axis=0, keepdims=True)[None, None]
    sq_ref[...] += jnp.sum(acc * acc, axis=0, keepdims=True)[None, None]

    hpre_ref[...] = acc.reshape(1, t_ho, wo, c_out).astype(hpre_ref.dtype)


# --------------------------------------------------------------------------- #
# Pass 2 (fused): per-channel affine (folded GN) + SiLU + NHWC -> NCHW
# --------------------------------------------------------------------------- #
def _gn_silu_nchw_kernel(h_ref, scale_ref, bias_ref, o_ref):
    # h_ref: (1, Ho, Wo, C)   o_ref: (1, C, Ho*Wo)  (NCHW with flat spatial dim)
    _, ho, wo, c = h_ref.shape
    h = h_ref[...].reshape(ho * wo, c).astype(jnp.float32)
    y = h * scale_ref[...].reshape(1, c) + bias_ref[...].reshape(1, c)
    y = y * jax.nn.sigmoid(y)                           # SiLU (sigmoid -> EUP)
    # 2-D XLU transpose (idle slot here); wrapper reshape to NCHW is free.
    o_ref[...] = y.T.reshape(1, c, ho * wo).astype(o_ref.dtype)


# --------------------------------------------------------------------------- #
# Pass 2 (fallback): row-tiled NHWC affine + SiLU (wrapper transposes to NCHW)
# --------------------------------------------------------------------------- #
def _gn_silu_nhwc_kernel(h_ref, scale_ref, bias_ref, o_ref):
    h = h_ref[...].astype(jnp.float32)                  # (1, T_ho, Wo, C)
    y = h * scale_ref[...].reshape(1, 1, 1, -1) + bias_ref[...].reshape(1, 1, 1, -1)
    y = y * jax.nn.sigmoid(y)
    o_ref[...] = y.astype(o_ref.dtype)


# --------------------------------------------------------------------------- #
# Helpers
# --------------------------------------------------------------------------- #
def _largest_divisor_leq(n, cap):
    cap = max(1, min(n, int(cap)))
    for d in range(cap, 0, -1):
        if n % d == 0:
            return d
    return 1


def _round_up(x, m):
    return -(-x // m) * m


def _vmem_capacity_bytes():
    try:
        info = pltpu.get_tpu_info()
        for name in ("vmem_capacity_bytes", "vmem_bytes", "vmem_size_bytes"):
            cap = getattr(info, name, None)
            if cap:
                return int(cap)
    except Exception:
        pass
    return 64 * 2 ** 20          # conservative: v7x per-TensorCore VMEM


# --------------------------------------------------------------------------- #
# Wrapper
# --------------------------------------------------------------------------- #
def downblock_t_forward(x_nchw, embed, conv_w, dense_w, dense_b, gamma, beta,
                        *, stride, gn, eps=1e-5, tile_rows=None,
                        compute_dtype=jnp.bfloat16, interpret=False):
    """Pallas implementation of DownBlock_t.forward.

    x_nchw : [N, C_in, H, W]        embed : [N, E]
    conv_w : [C_out, C_in, K, K]    (no bias, VALID padding, stride `stride`)
    dense_w: [C_out, E]  dense_b: [C_out]
    gamma, beta : [C_out]           (GroupNorm affine)
    Returns [N, C_out, Ho, Wo].
    """
    N, C_in, H, W = x_nchw.shape
    C_out, c_in2, K, k2 = conv_w.shape
    assert c_in2 == C_in and k2 == K
    s = int(stride)
    Ho = (H - K) // s + 1
    Wo = (W - K) // s + 1
    assert Ho >= 1 and Wo >= 1, "empty conv output"
    num_groups = gn if C_out > 32 else 4            # mirrors the PyTorch module
    assert C_out % num_groups == 0
    out_dtype = x_nchw.dtype
    if compute_dtype is None:
        compute_dtype = jnp.bfloat16
    h_dtype = compute_dtype                          # bf16 h_pre unless f32 requested

    Kc = K * K * C_in

    # ---- wrapper-side im2col (C_in tiny -> inflation negligible) ------------
    x_nhwc = jnp.transpose(x_nchw, (0, 2, 3, 1))
    cols = []
    for kh in range(K):
        for kw in range(K):
            cols.append(x_nhwc[:, kh: kh + (Ho - 1) * s + 1: s,
                                  kw: kw + (Wo - 1) * s + 1: s, :])
    x_col = jnp.concatenate(cols, axis=-1).astype(compute_dtype)   # (N,Ho,Wo,Kc)

    # conv weights flattened with the same (kh, kw, c_in) ordering
    w_mat = jnp.transpose(conv_w, (2, 3, 1, 0)).reshape(Kc, C_out).astype(compute_dtype)

    # Dense(embed): tiny per-batch matvec, hoisted out of the kernel.
    emb = (embed.astype(jnp.float32) @ dense_w.astype(jnp.float32).T
           + dense_b.astype(jnp.float32))[:, None, :]               # (N, 1, C_out)

    # ---- tiling & VMEM budgets ----------------------------------------------
    in_b = jnp.dtype(compute_dtype).itemsize
    h_b = jnp.dtype(h_dtype).itemsize
    Kc_p = _round_up(Kc, 128)
    C_p = _round_up(C_out, 128)
    vmem_cap = _vmem_capacity_bytes()

    per_row = Wo * (2 * Kc_p * in_b + 2 * C_p * h_b + 3 * C_p * 4)   # padded, 2x buf
    if tile_rows is None:
        budget = int(0.3 * vmem_cap)
        tile_rows = max(1, budget // max(per_row, 1))
    if tile_rows >= Ho:
        T_ho = Ho
    else:
        T_ho = _largest_divisor_leq(Ho, tile_rows)
        # guard against pathological tiny divisors (e.g. prime Ho)
        if T_ho < max(2, tile_rows // 3) and Ho * per_row <= int(0.6 * vmem_cap):
            T_ho = Ho
    num_pt = Ho // T_ho

    # split the row-tile axis so a single batch element still uses both v7x cores
    num_outer = 2 if (N == 1 and num_pt >= 2 and num_pt % 2 == 0) else 1
    num_inner = num_pt // num_outer

    est1 = T_ho * per_row + 2 * _round_up(Kc, 8) * C_p * in_b + 16 * C_p * 4
    vmem1 = int(min(0.9 * vmem_cap, max(48 * 2 ** 20, 2 * est1)))

    # ---- pass 1: conv + embed add + per-channel GN statistics ---------------
    h_pre, csum, csq = pl.pallas_call(
        _conv_embed_stats_kernel,
        grid=(N, num_outer, num_inner),
        in_specs=(
            pl.BlockSpec((1, T_ho, Wo, Kc),
                         lambda b, o, i: (b, o * num_inner + i, 0, 0)),
            pl.BlockSpec((Kc, C_out), lambda b, o, i: (0, 0)),      # resident
            pl.BlockSpec((1, 1, C_out), lambda b, o, i: (b, 0, 0)),
        ),
        out_specs=(
            pl.BlockSpec((1, T_ho, Wo, C_out),
                         lambda b, o, i: (b, o * num_inner + i, 0, 0)),
            pl.BlockSpec((1, 1, 1, C_out), lambda b, o, i: (b, o, 0, 0)),
            pl.BlockSpec((1, 1, 1, C_out), lambda b, o, i: (b, o, 0, 0)),
        ),
        out_shape=(
            jax.ShapeDtypeStruct((N, Ho, Wo, C_out), h_dtype),
            jax.ShapeDtypeStruct((N, num_outer, 1, C_out), jnp.float32),
            jax.ShapeDtypeStruct((N, num_outer, 1, C_out), jnp.float32),
        ),
        compiler_params=pltpu.CompilerParams(
            dimension_semantics=("parallel", "parallel", "arbitrary"),
            vmem_limit_bytes=vmem1),
        interpret=interpret,
    )(x_col, w_mat, emb)

    # ---- tiny group-stat finalisation (XLA glue on [N, C] values) -----------
    gs = C_out // num_groups
    cnt = jnp.float32(Ho * Wo * gs)
    csum2 = jnp.sum(csum, axis=(1, 2))                   # (N, C_out)
    csq2 = jnp.sum(csq, axis=(1, 2))
    gsum = csum2.reshape(N, num_groups, gs).sum(-1)
    gsq = csq2.reshape(N, num_groups, gs).sum(-1)
    mean = gsum / cnt
    # TODO(synk): E[x^2]-E[x]^2 in f32 can cancel for very large spatial extents;
    # switch to a centered / two-pass accumulation if that regime shows up.
    var = jnp.maximum(gsq / cnt - mean * mean, 0.0)
    inv = jax.lax.rsqrt(var + jnp.float32(eps))
    inv_c = jnp.repeat(inv, gs, axis=1)                  # (N, C_out)
    mean_c = jnp.repeat(mean, gs, axis=1)
    scale_c = gamma.astype(jnp.float32)[None, :] * inv_c
    bias_c = beta.astype(jnp.float32)[None, :] - mean_c * scale_c
    scale_p = scale_c[:, None, :]                        # (N, 1, C_out)
    bias_p = bias_c[:, None, :]

    # ---- pass 2: streaming normalize + SiLU (+ fused NCHW output) -----------
    est2 = Ho * Wo * (2 * C_p * h_b + 2 * C_p * 4 + 3 * C_p * 4)
    vmem2 = int(min(0.9 * vmem_cap, max(48 * 2 ** 20, 2 * est2)))
    use_fused = est2 <= int(0.45 * vmem_cap)

    def _pass2_fused():
        y = pl.pallas_call(
            _gn_silu_nchw_kernel,
            grid=(N,),
            in_specs=(
                pl.BlockSpec((1, Ho, Wo, C_out), lambda b: (b, 0, 0, 0)),
                pl.BlockSpec((1, 1, C_out), lambda b: (b, 0, 0)),
                pl.BlockSpec((1, 1, C_out), lambda b: (b, 0, 0)),
            ),
            out_specs=pl.BlockSpec((1, C_out, Ho * Wo), lambda b: (b, 0, 0)),
            out_shape=jax.ShapeDtypeStruct((N, C_out, Ho * Wo), out_dtype),
            compiler_params=pltpu.CompilerParams(
                dimension_semantics=("parallel",),
                vmem_limit_bytes=vmem2),
            interpret=interpret,
        )(h_pre, scale_p, bias_p)
        return y.reshape(N, C_out, Ho, Wo)       # metadata-only reshape (free)

    def _pass2_rowtiled():
        # TODO(synk): fallback pays one extra XLA transpose pass over the output;
        # only used when the fused NCHW kernel cannot fit / lower.
        y = pl.pallas_call(
            _gn_silu_nhwc_kernel,
            grid=(N, num_pt),
            in_specs=(
                pl.BlockSpec((1, T_ho, Wo, C_out), lambda b, p: (b, p, 0, 0)),
                pl.BlockSpec((1, 1, C_out), lambda b, p: (b, 0, 0)),
                pl.BlockSpec((1, 1, C_out), lambda b, p: (b, 0, 0)),
            ),
            out_specs=pl.BlockSpec((1, T_ho, Wo, C_out), lambda b, p: (b, p, 0, 0)),
            out_shape=jax.ShapeDtypeStruct((N, Ho, Wo, C_out), out_dtype),
            compiler_params=pltpu.CompilerParams(
                dimension_semantics=("parallel", "parallel"),
                vmem_limit_bytes=vmem1),
            interpret=interpret,
        )(h_pre, scale_p, bias_p)
        return jnp.transpose(y, (0, 3, 1, 2))

    if use_fused:
        try:
            return _pass2_fused()
        except Exception:
            return _pass2_rowtiled()
    return _pass2_rowtiled()


# --------------------------------------------------------------------------- #
# Pure-JAX reference (matches the PyTorch module)
# --------------------------------------------------------------------------- #
def _reference_downblock(x, embed, conv_w, dense_w, dense_b, gamma, beta,
                         *, stride, gn, eps=1e-5):
    num_groups = gn if conv_w.shape[0] > 32 else 4
    h = jax.lax.conv_general_dilated(
        x.astype(jnp.float32), conv_w.astype(jnp.float32),
        window_strides=(stride, stride), padding="VALID",
        dimension_numbers=("NCHW", "OIHW", "NCHW"),
        precision=jax.lax.Precision.HIGHEST)
    d = (embed.astype(jnp.float32) @ dense_w.astype(jnp.float32).T
         + dense_b.astype(jnp.float32))
    h = h + d[:, :, None, None]
    n, c, ho, wo = h.shape
    hg = h.reshape(n, num_groups, -1)
    mean = hg.mean(axis=-1, keepdims=True)
    var = hg.var(axis=-1, keepdims=True)
    hn = (hg - mean) * jax.lax.rsqrt(var + eps)
    hn = hn.reshape(n, c, ho, wo)
    hn = hn * gamma.astype(jnp.float32)[None, :, None, None] \
        + beta.astype(jnp.float32)[None, :, None, None]
    return hn * jax.nn.sigmoid(hn)


if __name__ == "__main__":
    key = jax.random.PRNGKey(0)
    configs = [
        # stride-1, C_out=64 (> 32 -> gn groups), 2 row tiles, bf16 compute (default)
        dict(N=2, C_in=4, H=18, W=18, C_out=64, K=3, stride=1, gn=8, E=32,
             tile_rows=8, compute=jnp.bfloat16, tol=1e-1),
        # same geometry, f32 compute path (tighter structural check)
        dict(N=2, C_in=4, H=18, W=18, C_out=64, K=3, stride=1, gn=8, E=32,
             tile_rows=8, compute=jnp.float32, tol=5e-2),
        # stride-2, C_out=32 (<= 32 -> 4 groups), 2 row tiles
        dict(N=2, C_in=4, H=17, W=17, C_out=32, K=3, stride=2, gn=8, E=32,
             tile_rows=4, compute=jnp.bfloat16, tol=1e-1),
        # N=1 -> pass-1 row-tile axis split ("parallel" outer) for megacore
        dict(N=1, C_in=3, H=18, W=18, C_out=48, K=3, stride=1, gn=8, E=16,
             tile_rows=8, compute=jnp.bfloat16, tol=1e-1),
    ]
    for cfg in configs:
        key, *ks = jax.random.split(key, 8)
        N, C_in, H, W = cfg["N"], cfg["C_in"], cfg["H"], cfg["W"]
        C_out, K, s, gn, E = cfg["C_out"], cfg["K"], cfg["stride"], cfg["gn"], cfg["E"]

        x = jax.random.normal(ks[0], (N, C_in, H, W), jnp.float32)
        conv_w = jax.random.normal(ks[1], (C_out, C_in, K, K), jnp.float32) * (C_in * K * K) ** -0.5
        dense_w = jax.random.normal(ks[2], (C_out, E), jnp.float32) * E ** -0.5
        dense_b = 0.1 * jax.random.normal(ks[3], (C_out,), jnp.float32)
        gamma = 1.0 + 0.1 * jax.random.normal(ks[4], (C_out,), jnp.float32)
        beta = 0.1 * jax.random.normal(ks[5], (C_out,), jnp.float32)
        embed = jax.random.normal(ks[6], (N, E), jnp.float32)

        out = downblock_t_forward(
            x, embed, conv_w, dense_w, dense_b, gamma, beta,
            stride=s, gn=gn, tile_rows=cfg["tile_rows"],
            compute_dtype=cfg["compute"])
        out = jax.block_until_ready(out)

        ref = _reference_downblock(x, embed, conv_w, dense_w, dense_b, gamma, beta,
                                   stride=s, gn=gn)
        err = float(jnp.max(jnp.abs(out - ref)))
        if not (err < cfg["tol"]):
            raise AssertionError(
                f"Pallas DownBlock_t mismatch (stride={s}, compute={jnp.dtype(cfg['compute']).name}): "
                f"max abs err {err:.3e}")

    print("KERNEL_OK")
</pallas_src>

<mosaic_0001>
module attributes {stable_mosaic.version = 11 : i64} {
  func.func @_conv_embed_stats_kernel(%arg0: i32, %arg1: i32, %arg2: i32, %arg3: memref<1x8x16x36xbf16, #tpu.memory_space<vmem>>, %arg4: memref<36x64xbf16, #tpu.memory_space<vmem>>, %arg5: memref<1x1x64xf32, #tpu.memory_space<vmem>>, %arg6: memref<1x8x16x64xbf16, #tpu.memory_space<vmem>>, %arg7: memref<1x1x1x64xf32, #tpu.memory_space<vmem>>, %arg8: memref<1x1x1x64xf32, #tpu.memory_space<vmem>>) attributes {dimension_semantics = [#tpu.dimension_semantics<parallel>, #tpu.dimension_semantics<parallel>, #tpu.dimension_semantics<arbitrary>], iteration_bounds = array<i64: 2, 1, 2>, scalar_prefetch = 0 : i64, scratch_operands = 0 : i64, tpu.core_type = #tpu.core_type<tc>, window_params = [{transform_indices = @transform_0, window_bounds = array<i64: 1, 8, 16, 36>}, {pipeline_mode = #tpu.pipeline_mode<synchronous>, transform_indices = @transform_1, window_bounds = array<i64: 36, 64>}, {transform_indices = @transform_2, window_bounds = array<i64: 1, 1, 64>}, {transform_indices = @transform_3, window_bounds = array<i64: 1, 8, 16, 64>}, {transform_indices = @transform_4, window_bounds = array<i64: 1, 1, 1, 64>}, {transform_indices = @transform_5, window_bounds = array<i64: 1, 1, 1, 64>}]} {
    %c0_i32 = arith.constant 0 : i32
    %0 = arith.cmpi eq, %arg2, %c0_i32 : i32
    %1 = arith.extui %0 : i1 to i32
    %c0_i32_0 = arith.constant 0 : i32
    %2 = arith.cmpi ne, %1, %c0_i32_0 : i32
    scf.if %2 {
      %cst_31 = arith.constant 0.000000e+00 : f32
      %27 = vector.broadcast %cst_31 : f32 to vector<1x1x1x64xf32>
      %c0_32 = arith.constant 0 : index
      %c0_33 = arith.constant 0 : index
      %c0_34 = arith.constant 0 : index
      %c0_35 = arith.constant 0 : index
      %28 = vector.load %arg7[%c0_32, %c0_33, %c0_34, %c0_35] : memref<1x1x1x64xf32, #tpu.memory_space<vmem>>, vector<1x1x1x64xf32>
      tpu.vector_store %arg7[%c0_32, %c0_33, %c0_34, %c0_35], %27 {strides = array<i32>} : memref<1x1x1x64xf32, #tpu.memory_space<vmem>>, vector<1x1x1x64xf32>,
      %cst_36 = arith.constant 0.000000e+00 : f32
      %29 = vector.broadcast %cst_36 : f32 to vector<1x1x1x64xf32>
      %c0_37 = arith.constant 0 : index
      %c0_38 = arith.constant 0 : index
      %c0_39 = arith.constant 0 : index
      %c0_40 = arith.constant 0 : index
      %30 = vector.load %arg8[%c0_37, %c0_38, %c0_39, %c0_40] : memref<1x1x1x64xf32, #tpu.memory_space<vmem>>, vector<1x1x1x64xf32>
      tpu.vector_store %arg8[%c0_37, %c0_38, %c0_39, %c0_40], %29 {strides = array<i32>} : memref<1x1x1x64xf32, #tpu.memory_space<vmem>>, vector<1x1x1x64xf32>,
    } else {
    }
    %c0 = arith.constant 0 : index
    %c0_1 = arith.constant 0 : index
    %c0_2 = arith.constant 0 : index
    %c0_3 = arith.constant 0 : index
    %3 = vector.load %arg3[%c0, %c0_1, %c0_2, %c0_3] : memref<1x8x16x36xbf16, #tpu.memory_space<vmem>>, vector<1x8x16x36xbf16>
    %4 = vector.shape_cast %3 : vector<1x8x16x36xbf16> to vector<128x36xbf16>
    %c0_4 = arith.constant 0 : index
    %c0_5 = arith.constant 0 : index
    %5 = vector.load %arg4[%c0_4, %c0_5] : memref<36x64xbf16, #tpu.memory_space<vmem>>, vector<36x64xbf16>
    %cst = arith.constant dense<0.000000e+00> : vector<128x64xf32>
    %6 = tpu.matmul %4, %5, %cst {dimension_numbers = #tpu.dot_dimension_numbers<[1], [0], [0], [1], [0, 0, 1, 1], [], []>} : vector<128x36xbf16>, vector<36x64xbf16>, vector<128x64xf32> -> vector<128x64xf32>
    %c0_6 = arith.constant 0 : index
    %c0_7 = arith.constant 0 : index
    %c0_8 = arith.constant 0 : index
    %7 = vector.load %arg5[%c0_6, %c0_7, %c0_8] : memref<1x1x64xf32, #tpu.memory_space<vmem>>, vector<1x1x64xf32>
    %8 = vector.shape_cast %7 : vector<1x1x64xf32> to vector<1x64xf32>
    %9 = vector.broadcast %8 : vector<1x64xf32> to vector<128x64xf32>
    %10 = arith.addf %6, %9 : vector<128x64xf32>
    %c0_9 = arith.constant 0 : index
    %c0_10 = arith.constant 0 : index
    %c0_11 = arith.constant 0 : index
    %c0_12 = arith.constant 0 : index
    %11 = vector.load %arg7[%c0_9, %c0_10, %c0_11, %c0_12] : memref<1x1x1x64xf32, #tpu.memory_space<vmem>>, vector<1x1x1x64xf32>
    %cst_13 = arith.constant dense<0.000000e+00> : vector<64xf32>
    %12 = vector.multi_reduction <add>, %10, %cst_13 [0] : vector<128x64xf32> to vector<64xf32>
    %13 = vector.shape_cast %12 : vector<64xf32> to vector<1x64xf32>
    %14 = vector.shape_cast %13 : vector<1x64xf32> to vector<1x1x1x64xf32>
    %15 = arith.addf %11, %14 : vector<1x1x1x64xf32>
    %c0_14 = arith.constant 0 : index
    %c0_15 = arith.constant 0 : index
    %c0_16 = arith.constant 0 : index
    %c0_17 = arith.constant 0 : index
    %16 = vector.load %arg7[%c0_14, %c0_15, %c0_16, %c0_17] : memref<1x1x1x64xf32, #tpu.memory_space<vmem>>, vector<1x1x1x64xf32>
    tpu.vector_store %arg7[%c0_14, %c0_15, %c0_16, %c0_17], %15 {strides = array<i32>} : memref<1x1x1x64xf32, #tpu.memory_space<vmem>>, vector<1x1x1x64xf32>,
    %c0_18 = arith.constant 0 : index
    %c0_19 = arith.constant 0 : index
    %c0_20 = arith.constant 0 : index
    %c0_21 = arith.constant 0 : index
    %17 = vector.load %arg8[%c0_18, %c0_19, %c0_20, %c0_21] : memref<1x1x1x64xf32, #tpu.memory_space<vmem>>, vector<1x1x1x64xf32>
    %18 = arith.mulf %10, %10 : vector<128x64xf32>
    %cst_22 = arith.constant dense<0.000000e+00> : vector<64xf32>
    %19 = vector.multi_reduction <add>, %18, %cst_22 [0] : vector<128x64xf32> to vector<64xf32>
    %20 = vector.shape_cast %19 : vector<64xf32> to vector<1x64xf32>
    %21 = vector.shape_cast %20 : vector<1x64xf32> to vector<1x1x1x64xf32>
    %22 = arith.addf %17, %21 : vector<1x1x1x64xf32>
    %c0_23 = arith.constant 0 : index
    %c0_24 = arith.constant 0 : index
    %c0_25 = arith.constant 0 : index
    %c0_26 = arith.constant 0 : index
    %23 = vector.load %arg8[%c0_23, %c0_24, %c0_25, %c0_26] : memref<1x1x1x64xf32, #tpu.memory_space<vmem>>, vector<1x1x1x64xf32>
    tpu.vector_store %arg8[%c0_23, %c0_24, %c0_25, %c0_26], %22 {strides = array<i32>} : memref<1x1x1x64xf32, #tpu.memory_space<vmem>>, vector<1x1x1x64xf32>,
    %24 = vector.shape_cast %10 : vector<128x64xf32> to vector<1x8x16x64xf32>
    %25 = arith.truncf %24 : vector<1x8x16x64xf32> to vector<1x8x16x64xbf16>
    %c0_27 = arith.constant 0 : index
    %c0_28 = arith.constant 0 : index
    %c0_29 = arith.constant 0 : index
    %c0_30 = arith.constant 0 : index
    %26 = vector.load %arg6[%c0_27, %c0_28, %c0_29, %c0_30] : memref<1x8x16x64xbf16, #tpu.memory_space<vmem>>, vector<1x8x16x64xbf16>
    tpu.vector_store %arg6[%c0_27, %c0_28, %c0_29, %c0_30], %25 {strides = array<i32>} : memref<1x8x16x64xbf16, #tpu.memory_space<vmem>>, vector<1x8x16x64xbf16>,
    return
  }
  func.func @transform_0(%arg0: i32, %arg1: i32, %arg2: i32) -> (i32, i32, i32, i32) {
    %c2_i32 = arith.constant 2 : i32
    %0 = arith.muli %arg1, %c2_i32 : i32
    %1 = arith.addi %0, %arg2 : i32
    %c0_i32 = arith.constant 0 : i32
    %c0_i32_0 = arith.constant 0 : i32
    %c0_i32_1 = arith.constant 0 : i32
    return %arg0, %1, %c0_i32, %c0_i32_0 : i32, i32, i32, i32
  }
  func.func @transform_1(%arg0: i32, %arg1: i32, %arg2: i32) -> (i32, i32) {
    %c0_i32 = arith.constant 0 : i32
    %c0_i32_0 = arith.constant 0 : i32
    %c0_i32_1 = arith.constant 0 : i32
    return %c0_i32, %c0_i32_0 : i32, i32
  }
  func.func @transform_2(%arg0: i32, %arg1: i32, %arg2: i32) -> (i32, i32, i32) {
    %c0_i32 = arith.constant 0 : i32
    %c0_i32_0 = arith.constant 0 : i32
    %c0_i32_1 = arith.constant 0 : i32
    return %arg0, %c0_i32, %c0_i32_0 : i32, i32, i32
  }
  func.func @transform_3(%arg0: i32, %arg1: i32, %arg2: i32) -> (i32, i32, i32, i32) {
    %c2_i32 = arith.constant 2 : i32
    %0 = arith.muli %arg1, %c2_i32 : i32
    %1 = arith.addi %0, %arg2 : i32
    %c0_i32 = arith.constant 0 : i32
    %c0_i32_0 = arith.constant 0 : i32
    %c0_i32_1 = arith.constant 0 : i32
    return %arg0, %1, %c0_i32, %c0_i32_0 : i32, i32, i32, i32
  }
  func.func @transform_4(%arg0: i32, %arg1: i32, %arg2: i32) -> (i32, i32, i32, i32) {
    %c0_i32 = arith.constant 0 : i32
    %c0_i32_0 = arith.constant 0 : i32
    %c0_i32_1 = arith.constant 0 : i32
    return %arg0, %arg1, %c0_i32, %c0_i32_0 : i32, i32, i32, i32
  }
  func.func @transform_5(%arg0: i32, %arg1: i32, %arg2: i32) -> (i32, i32, i32, i32) {
    %c0_i32 = arith.constant 0 : i32
    %c0_i32_0 = arith.constant 0 : i32
    %c0_i32_1 = arith.constant 0 : i32
    return %arg0, %arg1, %c0_i32, %c0_i32_0 : i32, i32, i32, i32
  }
}

</mosaic_0001>

<bundles_post_ra>
// kernel: tpu_custom_call.1
= control target key start
LH: loop header
LB: loop body
LE: loop exit
PB: predicated region body
PF: predicated region fallthrough
CT: control target
= control target key end

     0   :  { %s2024_s0 = inlined_call_operand.hbm [shape: bf16[2,16,16,36], index: 0, kind: input, shape index: {}]   ;;  %s2025_s1 = inlined_call_operand.hbm [shape: bf16[36,64], index: 1, kind: input, shape index: {}]   ;;  %s2026_s2 = inlined_call_operand.vmem [shape: f32[2,1,64], index: 2, kind: input, shape index: {}]   ;;  %s2027_s3 = inlined_call_operand.hbm [shape: bf16[2,16,16,64], index: 3, kind: output, shape index: {0}]   ;;  %s2028_s4 = inlined_call_operand.hbm [shape: f32[2,1,1,64], index: 4, kind: output, shape index: {1}]   ;;  %s2029_s5 = inlined_call_operand.hbm [shape: f32[2,1,1,64], index: 5, kind: output, shape index: {2}]  }
   0x1   :  { %2050 = sst [smem:[#allocation22_spill]] %s2025_s1 }
   0x2   :  { %2051 = sst [smem:[#allocation23_spill]] %s2027_s3 }
   0x3   :  { %2052 = sst [smem:[#allocation24_spill]] %s2028_s4 }
   0x4   :  { %2053 = sst [smem:[#allocation25_spill]] %s2029_s5 }
   0x5   :  { %11 = vsyncpa [#allocation3], 0 }
   0x6   :  { %13 = vsyncpa [#allocation3 + $0x1], 0 }
   0x7   :  { %14 = vsyncpa [#allocation6], 0 }
   0x8   :  { %15 = vsyncpa [#allocation4], 0 }
   0x9   :  { %17 = vsyncpa [#allocation4 + $0x1], 0 }
   0xa   :  { %18 = vsyncpa [#allocation9], 0 }
   0xb   :  { %20 = vsyncpa [#allocation9 + $0x1], 0  ;;  %s1500_s18 = smov 0   ;;  %s1502_s19 = smov 0  }
   0xc   :  { %s1504_s20 = smov 0   ;;  %s1506_s21 = smov 0  }
   0xd   :  { %s1508_s22 = smov 0   ;;  %s1510_s23 = smov 0  }
   0xe   :  { %s1512_s24 = smov 0   ;;  %s1514_s25 = smov 0  }
   0xf   :  { %s1516_s26 = smov 0   ;;  %s1518_s27 = smov 0  }
  0x10   :  { %s1520_s28 = smov 0  }
  0x11 LB: > { %2054 = sst [smem:[#allocation15_spill]] %s1430_s21  ;;  %s1554_s29 = sadd.s32 4294967295, %s1458_s28   ;;  %s1458_s28 = sphi %s1520_s28, %s26_s28   ;;  %s1454_s27 = sphi %s1518_s27, %s2104_s27   ;;  %s1450_s26 = sphi %s1516_s26, %s2103_s26   ;;  %s1446_s25 = sphi %s1514_s25, %s2102_s25   ;;  %s1442_s24 = sphi %s1512_s24, %s2101_s24   ;;  %s1438_s23 = sphi %s1510_s23, %s2100_s23   ;;  %s1434_s22 = sphi %s1508_s22, %s2099_s22   ;;  %s1430_s21 = sphi %s1506_s21, %s2098_s21   ;;  %s1426_s20 = sphi %s1504_s20, %s2097_s20   ;;  %s1422_s19 = sphi %s1502_s19, %s2096_s19   ;;  %s1418_s18 = sphi %s1500_s18, %s2095_s18  }
  0x12   : > { %s2030_s30 = sadd.s32 4294967294, %s1458_s28   ;;  %p71_p0 = scmp.ne.s32.totalorder %s1434_s22, %s1430_s21 }
  0x13   : > { %p2032_p1 = scmp.eq.s32.totalorder %s1554_s29, 0  ;;  %p2033_p2 = scmp.eq.s32.totalorder %s1554_s29, 3 }
  0x14   : > { %p154_p3 = scmp.eq.s32.totalorder %s2030_s30, 3  ;;  %p175_p6 = scmp.ne.s32.totalorder %s1426_s20, %s1422_s19 }
  0x15   : > { %p1565_p4 = por %p2032_p1, %p71_p0  ;;  %p181_p7 = scmp.ne.s32.totalorder %s1422_s19, %s1418_s18 }
  0x16   : > { %p1570_p5 = por %p154_p3, %p71_p0  ;;  %p958_p8 = scmp.ge.s32.totalorder %s1458_s28, 1 }
  0x17   : > { %s2055_s6 = scalar_select %p1565_p4, 1, 0 }
  0x18   : > { %s2056_s8 = scalar_select %p1570_p5, 1, 0 }
  0x19   : > { %p1580_p9 = por %p175_p6, %p2033_p2  ;;  %p217_p10 = scmp.lt.s32.totalorder %s1458_s28, 5 }
  0x1a   : > { %2057 = sst [smem:[#allocation16_spill]] %s2056_s8  ;;  %p1585_p11 = por %p181_p7, %p154_p3 }
  0x1b   : > { %s2058_s9 = scalar_select %p1580_p9, 1, 0 }
  0x1c   : > { %s2060_s10 = scalar_select %p1585_p11, 1, 0 }
  0x1d   : > { %2059 = sst [smem:[#allocation17_spill]] %s2058_s9  ;;  %p1589_p12 = pnand %p958_p8, %p217_p10 }
  0x1e   : > { %2061 = sst [smem:[#allocation18_spill]] %s2060_s10  ;;  %s1460_s12 = smov [#allocation5]  }
  0x1f   : > { %s2062_s11 = scalar_select %p1589_p12, 1, 0 }
  0x20   : > { %s229_s13 = sshll.u32 %s1460_s12, 4  ;;  %p1087_p13 = pneg %p1589_p12  ;;  %s230_s13 = int_to_ptr.vmem [resolvable:$true] %s229_s13 }
  0x21   : > { %s2064_s1 = sld [smem:[#allocation22_spill]] }
  0x22   : > { %p1597_p0 = pnand %p1087_p13, %p2032_p1 }
  0x24   : > { %p1216_p6 = pneg %p1597_p0 }
  0x27   : > { %s1214_s17 = scalar_lea.hbm %s2064_s1, 320 }
  0x28   : > { %p1215_p3 = scmp.ne.s32.totalorder %s2064_s1, %s1214_s17  ;;  %p1221_p10 = scmp.lt.u32.totalorder %s1214_s17, %s2064_s1 }
  0x2a   : > { %p1217_p7 = pnand %p1216_p6, %p1215_p3 }
  0x2c   : > { %p1218_p8 = pneg %p1217_p7 }
  0x2e   : > { %p1223_p13 = pnand %p1221_p10, %p1218_p8 }
  0x30   : > { %1226 = shalt.err (!%p1223_p13)
}
  0x31   : > { %s1227_s10 = scalar_lea.vmem %s230_s13, 320  ;;  %p1235_p5 = scmp.lt.s32.totalorder %s230_s13, %s230_s13 }
  0x32   : > { %p1228_p1 = scmp.ne.s32.totalorder %s230_s13, %s1227_s10  ;;  %p1236_p9 = scmp.lt.s32.totalorder %s1227_s10, %s1227_s10 }
  0x34   : > { %p1230_p2 = pnand %p1228_p1, %p1216_p6  ;;  %p1237_p4 = por %p1236_p9, %p1235_p5 }
  0x36   : > { %p1231_p11 = pneg %p1230_p2 }
  0x38   : > { %p1238_p12 = pnand %p1237_p4, %p1231_p11 }
  0x3a   : > { %1241 = shalt.err (!%p1238_p12)
}
  0x3b   : > { %s2037_s30 = smov 64   ;;  %s2038_s7 = smov 4  }
  0x3c   : > { %1090 = dma.hbm_to_vmem [thread:$0]  (!%p1597_p0), %s2064_s1, 320, %s230_s13, [#allocation6], %s2037_s30, %s2037_s30, %s2038_s7  }
  0x3d   : > { %s38_s16 = sadd.s32 1, %s1450_s26  ;;  %s45_s17 = sadd.s32 1, %s1454_s27 }
  0x3e   : > { %p39_p1 = scmp.ge.s32.totalorder %s38_s16, 2  ;;  %s58_s18 = sadd.s32 1, %s1438_s23 }
  0x3f   : > { %p65_p2 = scmp.ne.s32.totalorder %s1438_s23, %s1434_s22  ;;  %p66_p4 = scmp.eq.s32.totalorder %s1458_s28, 0 }
  0x40   : > { %s2106_s16 = smov (%p39_p1, %s38_s16), 0  ;;  %s2108_s17 = smov (!%p39_p1, %s45_s17), %s1454_s27 }
  0x41   : > { %2065 = sst [smem:[#allocation19_spill]] %s2106_s16  ;;  %s54_s14 = ssub.s32 %s1450_s26, %s2106_s16 }
  0x42   : > { %p1631_p5 = por %p66_p4, %p65_p2  ;;  %p47_p9 = scmp.ge.s32.totalorder %s2108_s17, 2 }
  0x43   : > { %p2067_p11 = scmp.eq.s32.totalorder %s1554_s29, 3  ;;  %p1106_p0 = scmp.lt.s32.totalorder %s1458_s28, 4 }
  0x44   : > { %s243_s10 = sand.u32 1, %s1438_s23   ;;  %s2110_s17 = smov (%p47_p9, %s2108_s17), 0 }
  0x45   : > { %p1637_p12 = por %p2067_p11, %p65_p2  ;;  %2070 = sst [smem:[#allocation21_spill]] %s2110_s17 }
  0x46   : > { %s961_s15 = sshll.u32 %s243_s10, 6  ;;  %s53_s30 = ssub.s32 %s1454_s27, %s2110_s17 }
  0x47   : > { %s2068_s13 = scalar_select %p1637_p12, 1, 0 }
  0x48   : > { %s55_s7 = sor.u32 %s54_s14, %s53_s30  ;;  %p163_p3 = scmp.eq.s32.totalorder %s53_s30, 0 }
  0x49   : > { %2069 = sst [smem:[#allocation20_spill]] %s2068_s13  ;;  %p56_p6 = scmp.eq.s32.totalorder %s55_s7, 0 }
  0x4a   : > { %s1016_s1 = sshll.u32 %s1450_s26, 4  ;;  %s2071_s16 = sadd.s32 1, %s1426_s20 }
  0x4b   : > { %s1651_s8 = scalar_select %p163_p3, %s1426_s20, %s2071_s16  }
  0x4c   : > { %s1654_s21 = scalar_select %p56_p6, %s1438_s23, %s58_s18  }
  0x4d   : > { %s964_s5 = sshll.u32 %s1454_s27, 5  ;;  %s247_s4 = scalar_lea.vmem [#allocation2], %s961_s15 }
  0x4e   : > { %s259_s9 = sshll.u32 %s247_s4, 4  ;;  %s256_s13 = sadd.s32 %s1016_s1, %s964_s5  ;;  %s1657_s9 = int_to_ptr.vmem [resolvable:$true] %s259_s9 }
  0x4f   : > { %s965_s3 = sshll.u32 %s256_s13, 6  ;;  %p1663_p7 = pnand %p1106_p0, %p1631_p5 }
  0x50   : > { %s1670_s16 = scalar_lea.hbm %s2024_s0, %s965_s3  ;;  %s1672_s1 = scalar_lea.sflag [#allocation3], %s243_s10 }
  0x51   : > { %s1242_s4 = scalar_lea.hbm %s1670_s16, 1024  ;;  %p1244_p10 = pneg %p1663_p7 }
  0x52   : > { %p1243_p8 = scmp.ne.s32.totalorder %s1670_s16, %s1242_s4  ;;  %s1247_s14 = scalar_lea.hbm %s2024_s0, 4096 }
  0x53   : > { %p1248_p2 = scmp.lt.u32.totalorder %s1670_s16, %s2024_s0  ;;  %p1249_p4 = scmp.lt.u32.totalorder %s1247_s14, %s1242_s4 }
  0x54   : > { %p1245_p13 = pnand %p1244_p10, %p1243_p8  ;;  %p1251_p9 = scmp.lt.u32.totalorder %s1242_s4, %s1670_s16 }
  0x55   : > { %p1250_p5 = por %p1249_p4, %p1248_p2 }
  0x56   : > { %p1246_p1 = pneg %p1245_p13 }
  0x57   : > { %p1252_p11 = por %p1251_p9, %p1250_p5 }
  0x59   : > { %p1253_p0 = pnand %p1252_p11, %p1246_p1 }
  0x5b   : > { %1256 = shalt.err (!%p1253_p0)
}
  0x5c   : > { %s1257_s13 = scalar_lea.vmem %s1657_s9, 1024  ;;  %s1463_s10 = smov [#allocation2]  }
  0x5d   : > { %p1258_p3 = scmp.ne.s32.totalorder %s1657_s9, %s1257_s13  ;;  %s1262_s15 = sshll.u32 %s1463_s10, 4  ;;  %s1263_s15 = int_to_ptr.vmem [resolvable:$false] %s1262_s15 }
  0x5e   : > { %s1264_s30 = scalar_lea.vmem %s1263_s15, 2048  ;;  %p1265_p13 = scmp.lt.s32.totalorder %s1657_s9, %s1263_s15 }
  0x5f   : > { %p1260_p6 = pnand %p1258_p3, %p1244_p10  ;;  %p1266_p2 = scmp.lt.s32.totalorder %s1264_s30, %s1257_s13 }
  0x61   : > { %p1261_p8 = pneg %p1260_p6  ;;  %p1267_p4 = por %p1266_p2, %p1265_p13 }
  0x63   : > { %p1268_p5 = pnand %p1267_p4, %p1261_p8 }
  0x65   : > { %1271 = shalt.err (!%p1268_p5)
}
  0x66   : > { %s2073_s7 = smov 4   ;;  %s2074_s4 = smov 64  }
  0x67   : > { %1094 = dma.hbm_to_vmem [thread:$0]  (!%p1663_p7), %s1670_s16, 1024, %s1657_s9, %s1672_s1, %s2074_s4, %s2074_s4, %s2073_s7  }
  0x68   : > { %p2075_p10 = scmp.ne.s32.totalorder %s2062_s11, 0 }
  0x69   : > { %s1706_s5 = sand.u32 (!%p2075_p10), 1, %s1434_s22   ;;  %p2076_p1 = scmp.ne.s32.totalorder (!%p2075_p10), %s2055_s6, 0 }
  0x6a   : > { %277 = sbr.rel (%p2075_p10) target bundleno = 452 (0x1c4), region = 32  ;;  %s967_s18 = sshll.u32 (!%p2075_p10), %s1706_s5, 6 }
  0x6b   : > { %s280_s14 = scalar_lea.sflag (!%p2075_p10), [#allocation3], %s1706_s5  ;;  %s1710_s3 = scalar_lea.vmem (!%p2075_p10), [#allocation2], %s967_s18 }
  0x71   : > { %1401 = dma.done.wait (%p2076_p1), %s280_s14, 1024  }
  0x72   : > { %1403 = vsyncadd (%p2076_p1), %s280_s14, 4294966272  ;;  %p2077_p7 = scmp.eq.s32.totalorder %s1554_s29, 0 }
  0x74   : > { %1405 = dma.done.wait (%p2077_p7), [#allocation6], 320   ;;  %p2078_p9 = pmov %p2077_p7 }
  0x75   : > { %s317_s9 = sand.u32 1, %s1422_s19   ;;  %p328_p11 = scmp.lt.s32.totalorder %s1446_s25, 1 }
  0x76   : > { %1407 = vsyncadd (%p2078_p9), [#allocation6], 4294966976  ;;  %s1729_s6 = scalar_lea.vmem [#allocation7], %s967_s18  ;;  %s1731_s12 = scalar_lea.vmem [#allocation8], %s317_s9 }
  0x77   : > { %s1723_s11 = scalar_select %p328_p11, %s1446_s25, 1 }
  0x78   : > { %s1733_s13 = scalar_lea.vmem [#allocation10], %s317_s9  ;;  %p970_p0 = scmp.ne.s32.totalorder %s1442_s24, 0 }
  0x79   : > { %s330_s1 = scalar_lea.vmem %s2026_s2, %s1723_s11  ;;  %vm339_vm0 = vcmask (!%p970_p0), 516096   ;;  %v1464_v0 = vmov (!%p970_p0), 0.0  }
  0x7a   : > { %338 = sbr.rel (%p970_p0) target bundleno = 129 (0x81), region = 44  ;;  %340 = vst.msk [vmem:[%s1731_s12] sm:$0x1] (!%p970_p0), %vm339_vm0, %v1464_v0  ;;  %341 = vst.msk [vmem:[%s1733_s13] sm:$0x1] (!%p970_p0), %vm339_vm0, %v1464_v0 }
  0x81 PF: > { %v1203_v1 = vld [vmem:[#allocation5] sm:$0xff]   ;;  %v1204_v2 = vld [vmem:[#allocation5 + $0x8] sm:$0xff]   ;;  %vm425_vm1 = vcmask 293888   ;;  %v1205_v3 = vld [vmem:[#allocation5 + $0x10] ss:$0 sps:$4 sm:$0x33]  }
  0x82   : > { %1045 = vmatprep.subr.bf16.mxu0 %v1203_v1  ;;  %v1206_v4 = vld [vmem:[%s1710_s3] sm:$0xff]   ;;  %1067 = vmatprep.subr.bf16.mxu1 %v1203_v1  ;;  %vm450_vm2 = vcmask 1041408   ;;  %v1207_v7 = vld [vmem:[%s1710_s3 + $0x8] sm:$0xff]   ;;  %v1208_v9 = vld [vmem:[%s1710_s3 + $0x10] sm:$0xff]   ;;  %vm713_vm3 = vcmask 519168   ;;  %vm552_vm4 = vcmask 523264  }
  0x83   : > { %1046 = vmatpush3.bf16.msra.mxu0 %v1203_v1  ;;  %1070 = vmatpush3.bf16.msra.mxu1 %v1203_v1  ;;  %v1210_v5 = vld [vmem:[%s1710_s3 + $0x20] sm:$0xff]   ;;  %v452_v6 = vsel %vm450_vm2, %v1205_v3, 0  ;;  %v1211_v8 = vld [vmem:[%s1710_s3 + $0x28] sm:$0xff]   ;;  %v1212_v10 = vld [vmem:[%s1710_s3 + $0x30] sm:$0xff]   ;;  %s1033_s30 = sshll.u32 %s1442_s24, 4  ;;  %s1010_s7 = sshll.u32 %s1446_s25, 5 }
  0x84   : > { %1047 = vmatprep.subr.bf16.mxu0 %v1204_v2  ;;  %1051 = vmatprep.mubr.msk.bf16.mxu0 %vm425_vm1, %v1206_v4  ;;  %v1209_v11 = vld [vmem:[%s1710_s3 + $0x18] sm:$0xff]   ;;  %v1759_v13 = vld [vmem:[%s330_s1] ss:$0 sm:$0xff]  ;;  %s754_s24 = sadd.s32 %s1033_s30, %s1010_s7  ;;  %s757_s18 = sshll.u32 %s1729_s6, 4  ;;  %s1864_s18 = int_to_ptr.vmem [resolvable:$true] %s757_s18 }
  0x85   : > { %1068 = vmatprep.subr.bf16.mxu1 %v1204_v2  ;;  %1059 = vmatprep.mubr.msk.bf16.mxu1 %vm425_vm1, %v1210_v5  ;;  %v1213_v12 = vld [vmem:[%s1710_s3 + $0x38] sm:$0xff]   ;;  %s1011_s4 = sshll.u32 %s754_s24, 6  ;;  %s2079_s9 = sld [smem:[#allocation23_spill]] }
  0x86   : > { %s731_s16 = scalar_lea.sflag [#allocation4], %s1706_s5  ;;  %s1272_s1 = scalar_lea.vmem %s1864_s18, 1024 }
  0x87   : > { %1048 = vmatpush3.bf16.msra.mxu0 %v1204_v2  ;;  %1071 = vmatpush3.bf16.msra.mxu1 %v1204_v2  ;;  %p1273_p3 = scmp.ne.s32.totalorder %s1864_s18, %s1272_s1  ;;  %s1465_s10 = smov [#allocation7]  }
  0x88   : > { %1073 = vmatprep.subr.msk.bf16.mxu0 %vm450_vm2, %v1205_v3  ;;  %1074 = vmatprep.subr.msk.bf16.mxu1 %vm450_vm2, %v1205_v3  ;;  %s1276_s15 = sshll.u32 %s1465_s10, 4  ;;  %s1277_s15 = int_to_ptr.vmem [resolvable:$false] %s1276_s15 }
  0x89   : > { %p1274_p6 = pnand %p1273_p3, %p1637_p12  ;;  %s1278_s30 = scalar_lea.vmem %s1277_s15, 2048 }
  0x8a   : > { %p1279_p13 = scmp.lt.s32.totalorder %s1864_s18, %s1277_s15  ;;  %p1280_p2 = scmp.lt.s32.totalorder %s1278_s30, %s1272_s1 }
  0x8b   : > { %1050 = vmatpush3.bf16.msra.mxu0 %v452_v6  ;;  %1072 = vmatpush3.bf16.msra.mxu1 %v452_v6  ;;  %s1862_s11 = scalar_lea.hbm %s2079_s9, %s1011_s4  ;;  %p1275_p8 = pneg %p1274_p6 }
  0x8c   : > { %p1281_p4 = por %p1280_p2, %p1279_p13 }
  0x8e   : > { %1052 = vmatmul.mubr.msk.bf16.vlgmr.msra.gmra.mrb[0].mxu0 %vm425_vm1, %v1207_v7  ;;  %1060 = vmatmul.mubr.msk.bf16.vlgmr.msra.gmra.mrb[0].mxu1 %vm425_vm1, %v1211_v8  ;;  %p1282_p5 = pnand %p1281_p4, %p1275_p8 }
  0x8f   : > { %1055 = vmatprep.mubr.msk.bf16.mxu0 %vm425_vm1, %v1208_v9  ;;  %1063 = vmatprep.mubr.msk.bf16.mxu1 %vm425_vm1, %v1212_v10 }
  0x96   : > { %1056 = vmatmul.mubr.msk.bf16.gmra.mrb[4].mxu0 %vm425_vm1, %v1209_v11  ;;  %1064 = vmatmul.mubr.msk.bf16.gmra.mrb[4].mxu1 %vm425_vm1, %v1213_v12 }
 0x161   : > { %v1053_v14 = vpop.f32.mrb[0].mxu0  ;;  %v1061_v15 = vpop.f32.mrb[0].mxu1 }
 0x162   : > { %v497_v16 = vadd.f32 %v1053_v14, %v1759_v13  ;;  %v488_v17 = vpop.f32.mrb[1].mxu0  ;;  %v520_v18 = vpop.f32.mrb[1].mxu1  ;;  %v1768_v29 = vadd.f32 %v1061_v15, %v1759_v13 }
 0x163   : > { %v489_v19 = vadd.f32 %v1759_v13, %v488_v17  ;;  %v1054_v20 = vpop.f32.mrb[2].mxu0  ;;  %v1062_v21 = vpop.f32.mrb[2].mxu1  ;;  %v1773_v32 = vadd.f32 %v1759_v13, %v520_v18 }
 0x164   : > { %v1019_v22 = vpack.c.bf16 %v497_v16, %v497_v16  ;;  %v500_v23 = vadd.f32 %v1054_v20, %v1759_v13  ;;  %v491_v24 = vpop.f32.mrb[3].mxu0  ;;  %v1764_v25 = vpop.f32.mrb[3].mxu1  ;;  %v596_v30 = vmul.f32 %v497_v16, %v497_v16  ;;  %v556_v39 = vsel %vm552_vm4, %v497_v16, 0.0 }
 0x165   : > { %v594_v26 = vmul.f32 %v489_v19, %v489_v19  ;;  %v1017_v27 = vpack.c.bf16 %v489_v19, %v489_v19  ;;  %v492_v28 = vadd.f32 %v1759_v13, %v491_v24  ;;  %v553_v33 = vsel %vm552_vm4, %v489_v19, 0.0 }
 0x166   : > { %716 = vst.msk [vmem:[%s1729_s6 + $0x8] sm:$0xf] %vm713_vm3, %v1019_v22  ;;  %v1020_v31 = vpack.c.bf16 %v500_v23, %v500_v23  ;;  %v597_v37 = vmul.f32 %v500_v23, %v500_v23  ;;  %v1027_v43 = vpack.c.bf16 %v1768_v29, %v1768_v29  ;;  %v613_v50 = vsel %vm552_vm4, %v596_v30, 0.0 }
 0x167   : > { %714 = vst.msk [vmem:[%s1729_s6] sm:$0xf] %vm713_vm3, %v1017_v27  ;;  %v554_v34 = vsel %vm552_vm4, %v492_v28, 0.0  ;;  %v595_v35 = vmul.f32 %v492_v28, %v492_v28  ;;  %v1018_v36 = vpack.c.bf16 %v492_v28, %v492_v28  ;;  %v610_v40 = vsel %vm552_vm4, %v594_v26, 0.0 }
 0x168   : > { %717 = vst.msk [vmem:[%s1729_s6 + $0xc] sm:$0xf] %vm713_vm3, %v1020_v31  ;;  %v555_v38 = vadd.f32 %v554_v34, %v553_v33  ;;  %724 = vst.msk [vmem:[%s1729_s6 + $0x28] sm:$0xf] %vm713_vm3, %v1027_v43  ;;  %v1025_v53 = vpack.c.bf16 %v1773_v32, %v1773_v32  ;;  %v558_v55 = vsel %vm552_vm4, %v500_v23, 0.0  ;;  %v615_v56 = vsel %vm552_vm4, %v597_v37, 0.0 }
 0x169   : > { %v611_v41 = vsel %vm552_vm4, %v595_v35, 0.0  ;;  %715 = vst.msk [vmem:[%s1729_s6 + $0x4] sm:$0xf] %vm713_vm3, %v1018_v36  ;;  %v1057_v42 = vpop.f32.mrb[4].mxu0  ;;  %v1065_v44 = vpop.f32.mrb[4].mxu1  ;;  %v1805_v4 = vadd.f32 %v1062_v21, %v1759_v13  ;;  %v602_v9 = vmul.f32 %v1773_v32, %v1773_v32  ;;  %v524_v18 = vadd.f32 %v1759_v13, %v1764_v25 }
 0x16a   : > { %v557_v45 = vadd.f32 %v556_v39, %v555_v38  ;;  %v612_v46 = vadd.f32 %v611_v41, %v610_v40  ;;  %v513_v47 = vadd.f32 %v1057_v42, %v1759_v13  ;;  %v504_v48 = vpop.f32.mrb[5].mxu0  ;;  %v536_v49 = vpop.f32.mrb[5].mxu1  ;;  %722 = vst.msk [vmem:[%s1729_s6 + $0x20] sm:$0xf] %vm713_vm3, %v1025_v53  ;;  %v1826_v21 = vadd.f32 %v1065_v44, %v1759_v13 }
 0x16b   : > { %v505_v51 = vadd.f32 %v1759_v13, %v504_v48  ;;  %v1058_v52 = vpop.f32.mrb[6].mxu0  ;;  %v1066_v54 = vpop.f32.mrb[6].mxu1  ;;  %v1028_v17 = vpack.c.bf16 %v1805_v4, %v1805_v4  ;;  %v537_v22 = vadd.f32 %v1759_v13, %v536_v49  ;;  %v568_v26 = vsel %vm552_vm4, %v1773_v32, 0.0 }
 0x16c   : > { %v614_v57 = vadd.f32 %v613_v50, %v612_v46  ;;  %v1023_v58 = vpack.c.bf16 %v513_v47, %v513_v47  ;;  %v507_v59 = vpop.f32.mrb[7].mxu0  ;;  %v539_v60 = vpop.f32.mrb[7].mxu1  ;;  %v559_v61 = vadd.f32 %v558_v55, %v557_v45  ;;  %v516_v2 = vadd.f32 %v1058_v52, %v1759_v13 }
 0x16d   : > { %v560_v62 = vsel %vm552_vm4, %v505_v51, 0.0  ;;  %v598_v63 = vmul.f32 %v505_v51, %v505_v51  ;;  %v1021_v0 = vpack.c.bf16 %v505_v51, %v505_v51  ;;  %v508_v3 = vadd.f32 %v1759_v13, %v507_v59  ;;  %725 = vst.msk [vmem:[%s1729_s6 + $0x2c] sm:$0xf] %vm713_vm3, %v1028_v17 }
 0x16e   : > { %720 = vst.msk [vmem:[%s1729_s6 + $0x18] sm:$0xf] %vm713_vm3, %v1023_v58  ;;  %v616_v1 = vadd.f32 %v615_v56, %v614_v57  ;;  %v561_v5 = vadd.f32 %v560_v62, %v559_v61  ;;  %v1024_v8 = vpack.c.bf16 %v516_v2, %v516_v2  ;;  %v600_v10 = vmul.f32 %v513_v47, %v513_v47 }
 0x16f   : > { %v617_v6 = vsel %vm552_vm4, %v598_v63, 0.0  ;;  %718 = vst.msk [vmem:[%s1729_s6 + $0x10] sm:$0xf] %vm713_vm3, %v1021_v0  ;;  %v562_v11 = vsel %vm552_vm4, %v508_v3, 0.0  ;;  %v599_v12 = vmul.f32 %v508_v3, %v508_v3  ;;  %v1022_v14 = vpack.c.bf16 %v508_v3, %v508_v3 }
 0x170   : > { %v618_v7 = vadd.f32 %v617_v6, %v616_v1  ;;  %v564_v15 = vsel %vm552_vm4, %v513_v47, 0.0  ;;  %721 = vst.msk [vmem:[%s1729_s6 + $0x1c] sm:$0xf] %vm713_vm3, %v1024_v8  ;;  %v563_v16 = vadd.f32 %v562_v11, %v561_v5  ;;  %v601_v19 = vmul.f32 %v516_v2, %v516_v2 }
 0x171   : > { %v619_v20 = vsel %vm552_vm4, %v599_v12, 0.0  ;;  %719 = vst.msk [vmem:[%s1729_s6 + $0x14] sm:$0xf] %vm713_vm3, %v1022_v14  ;;  %v1834_v25 = vadd.f32 %v1066_v54, %v1759_v13  ;;  %v621_v27 = vsel %vm552_vm4, %v600_v10, 0.0  ;;  %v566_v28 = vsel %vm552_vm4, %v516_v2, 0.0 }
 0x172   : > { %v565_v23 = vadd.f32 %v564_v15, %v563_v16  ;;  %v620_v24 = vadd.f32 %v619_v20, %v618_v7  ;;  %v1026_v30 = vpack.c.bf16 %v524_v18, %v524_v18  ;;  %v1031_v31 = vpack.c.bf16 %v1826_v21, %v1826_v21 }
 0x173   : > { %v623_v32 = vsel %vm552_vm4, %v601_v19, 0.0  ;;  %v625_v35 = vsel %vm552_vm4, %v602_v9, 0.0  ;;  %v603_v36 = vmul.f32 %v524_v18, %v524_v18  ;;  %v1029_v37 = vpack.c.bf16 %v537_v22, %v537_v22 }
 0x174   : > { %v622_v33 = vadd.f32 %v621_v27, %v620_v24  ;;  %v567_v34 = vadd.f32 %v566_v28, %v565_v23  ;;  %723 = vst.msk [vmem:[%s1729_s6 + $0x24] sm:$0xf] %vm713_vm3, %v1026_v30  ;;  %728 = vst.msk [vmem:[%s1729_s6 + $0x38] sm:$0xf] %vm713_vm3, %v1031_v31  ;;  %v1032_v40 = vpack.c.bf16 %v1834_v25, %v1834_v25  ;;  %v570_v42 = vsel %vm552_vm4, %v524_v18, 0.0 }
 0x175   : > { %v604_v41 = vmul.f32 %v1768_v29, %v1768_v29  ;;  %726 = vst.msk [vmem:[%s1729_s6 + $0x30] sm:$0xf] %vm713_vm3, %v1029_v37  ;;  %v540_v43 = vadd.f32 %v1759_v13, %v539_v60  ;;  %v572_v44 = vsel %vm552_vm4, %v1768_v29, 0.0  ;;  %v605_v13 = vmul.f32 %v1805_v4, %v1805_v4 }
 0x176   : > { %v569_v38 = vadd.f32 %v568_v26, %v567_v34  ;;  %v624_v39 = vadd.f32 %v623_v32, %v622_v33  ;;  %729 = vst.msk [vmem:[%s1729_s6 + $0x3c] sm:$0xf] %vm713_vm3, %v1032_v40  ;;  %v627_v29 = vsel %vm552_vm4, %v603_v36, 0.0  ;;  %v606_v47 = vmul.f32 %v537_v22, %v537_v22 }
 0x177   : > { %v1030_v48 = vpack.c.bf16 %v540_v43, %v540_v43  ;;  %v629_v51 = vsel %vm552_vm4, %v604_v41, 0.0  ;;  %v574_v52 = vsel %vm552_vm4, %v1805_v4, 0.0  ;;  %v576_v53 = vsel %vm552_vm4, %v537_v22, 0.0 }
 0x178   : > { %v626_v45 = vadd.f32 %v625_v35, %v624_v39  ;;  %v571_v46 = vadd.f32 %v570_v42, %v569_v38 }
 0x179   : > { %727 = vst.msk [vmem:[%s1729_s6 + $0x34] sm:$0xf] %vm713_vm3, %v1030_v48 }
 0x17a   : > { %v573_v49 = vadd.f32 %v572_v44, %v571_v46  ;;  %v628_v50 = vadd.f32 %v627_v29, %v626_v45 }
 0x17c   : > { %v630_v54 = vadd.f32 %v629_v51, %v628_v50  ;;  %v575_v55 = vadd.f32 %v574_v52, %v573_v49 }
 0x17d   : > { %1285 = shalt.err (!%p1282_p5)
}
 0x17e   : > { %s1286_s6 = scalar_lea.hbm %s1862_s11, 1024  ;;  %s1290_s4 = scalar_lea.hbm %s2079_s9, 4096 }
 0x17f   : > { %p1287_p10 = scmp.ne.s32.totalorder %s1862_s11, %s1286_s6  ;;  %p1291_p9 = scmp.lt.u32.totalorder %s1862_s11, %s2079_s9 }
 0x180   : > { %p1292_p11 = scmp.lt.u32.totalorder %s1290_s4, %s1286_s6  ;;  %p1294_p3 = scmp.lt.u32.totalorder %s1286_s6, %s1862_s11 }
 0x181   : > { %p1288_p1 = pnand %p1287_p10, %p1637_p12 }
 0x182   : > { %p1293_p0 = por %p1292_p11, %p1291_p9 }
 0x183   : > { %p1289_p7 = pneg %p1288_p1 }
 0x184   : > { %p1295_p6 = por %p1294_p3, %p1293_p0 }
 0x186   : > { %p1296_p8 = pnand %p1295_p6, %p1289_p7 }
 0x188   : > { %1299 = shalt.err (!%p1296_p8)
}
 0x189   : > { %s1466_s1 = smov 64   ;;  %s1467_s10 = smov 4   ;;  %v631_v56 = vsel %vm552_vm4, %v605_v13, 0.0  ;;  %v633_v57 = vsel %vm552_vm4, %v606_v47, 0.0  ;;  %v607_v58 = vmul.f32 %v540_v43, %v540_v43  ;;  %v577_v59 = vadd.f32 %v576_v53, %v575_v55  ;;  %v551_v22 = vld [vmem:[%s1731_s12] sm:$0x1] }
 0x18a   : > { %1081 = dma.vmem_to_hbm [thread:$0]  (%p1637_p12), %s1864_s18, 1024, %s1862_s11, %s731_s16, %s1466_s1, %s1466_s1, %s1467_s10   ;;  %v632_v60 = vadd.f32 %v631_v56, %v630_v54  ;;  %v608_v61 = vmul.f32 %v1826_v21, %v1826_v21  ;;  %v578_v62 = vsel %vm552_vm4, %v540_v43, 0.0  ;;  %v580_v1 = vsel %vm552_vm4, %v1826_v21, 0.0 }
 0x18b   : > { %v579_v0 = vadd.f32 %v578_v62, %v577_v59  ;;  %v609_v2 = vmul.f32 %v1834_v25, %v1834_v25  ;;  %v635_v3 = vsel %vm552_vm4, %v607_v58, 0.0  ;;  %v582_v7 = vsel %vm552_vm4, %v1834_v25, 0.0  ;;  %s735_s5 = sand.u32 1, %s1554_s29   ;;  %s1012_s18 = sshll.u32 %s1446_s25, 4  ;;  %v593_v26 = vld [vmem:[%s1733_s13] sm:$0x1] }
 0x18c   : > { %v634_v63 = vadd.f32 %v633_v57, %v632_v60  ;;  %v637_v6 = vsel %vm552_vm4, %v608_v61, 0.0  ;;  %s774_s11 = sshll.u32 %s1731_s12, 4  ;;  %s2081_s17 = sld [smem:[#allocation17_spill]]  ;;  %vm591_vm5 = vcmask 516096   ;;  %s1924_s11 = int_to_ptr.vmem [resolvable:$true] %s774_s11 }
 0x18d   : > { %v581_v4 = vadd.f32 %v580_v1, %v579_v0  ;;  %v639_v10 = vsel %vm552_vm4, %v609_v2, 0.0  ;;  %s788_s16 = sshll.u32 %s1733_s13, 4  ;;  %s2082_s6 = sld [smem:[#allocation24_spill]]  ;;  %s1933_s16 = int_to_ptr.vmem [resolvable:$true] %s788_s16 }
 0x18e   : > { %v636_v5 = vadd.f32 %v635_v3, %v634_v63  ;;  %s2083_s24 = sld [smem:[#allocation25_spill]]  ;;  %s1935_s3 = scalar_lea.sflag [#allocation9], %s735_s5 }
 0x18f   : > { %v583_v8 = vadd.f32 %v582_v7, %v581_v4  ;;  %s1300_s1 = scalar_lea.vmem %s1924_s11, 16  ;;  %s1468_s10 = smov [#allocation8]  }
 0x190   : > { %v638_v9 = vadd.f32 %v637_v6, %v636_v5  ;;  %p1301_p12 = scmp.ne.s32.totalorder %s1924_s11, %s1300_s1  ;;  %s1304_s15 = sshll.u32 %s1468_s10, 4  ;;  %s1305_s15 = int_to_ptr.vmem [resolvable:$false] %s1304_s15 }
 0x191   : > { %v584_v11 = vrot.slane %v583_v8, 4  ;;  %s1306_s30 = scalar_lea.vmem %s1305_s15, 32  ;;  %p1307_p5 = scmp.lt.s32.totalorder %s1924_s11, %s1305_s15 }
 0x192   : > { %v640_v12 = vadd.f32 %v639_v10, %v638_v9  ;;  %p2085_p13 = scmp.ne.s32.totalorder %s2081_s17, 0  ;;  %p1308_p10 = scmp.lt.s32.totalorder %s1306_s30, %s1300_s1 }
 0x193   : > { %v585_v14 = vadd.f32 %v584_v11, %v583_v8  ;;  %s1922_s7 = scalar_lea.hbm %s2082_s6, %s1012_s18 }
 0x194   : > { %v641_v15 = vrot.slane %v640_v12, 4  ;;  %s2084_s4 = smov %s2083_s24  ;;  %s1931_s14 = scalar_lea.hbm %s2083_s24, %s1012_s18 }
 0x195   : > { %v586_v17 = vrot.slane %v585_v14, 2  ;;  %p1302_p2 = pnand %p1301_p12, %p2085_p13  ;;  %p1309_p1 = por %p1308_p10, %p1307_p5 }
 0x196   : > { %v642_v16 = vadd.f32 %v641_v15, %v640_v12 }
 0x197   : > { %v587_v18 = vadd.f32 %v586_v17, %v585_v14  ;;  %p1303_p4 = pneg %p1302_p2 }
 0x198   : > { %v643_v19 = vrot.slane %v642_v16, 2 }
 0x199   : > { %v588_v20 = vrot.slane %v587_v18, 1  ;;  %p1310_p7 = pnand %p1309_p1, %p1303_p4 }
 0x19a   : > { %v644_v21 = vadd.f32 %v643_v19, %v642_v16 }
 0x19b   : > { %v589_v23 = vadd.f32 %v588_v20, %v587_v18 }
 0x19c   : > { %v645_v24 = vrot.slane %v644_v21, 1 }
 0x19d   : > { %v590_v25 = vadd.f32 %v589_v23, %v551_v22 }
 0x19e   : > { %v646_v27 = vadd.f32 %v645_v24, %v644_v21 }
 0x19f   : > { %592 = vst.msk [vmem:[%s1731_s12] sm:$0x1] %vm591_vm5, %v590_v25 }
 0x1a0   : > { %v647_v28 = vadd.f32 %v646_v27, %v593_v26 }
 0x1a1   : > { %1313 = shalt.err (!%p1310_p7)
}
 0x1a2   : > { %s1314_s12 = scalar_lea.hbm %s1922_s7, 16  ;;  %s1318_s25 = scalar_lea.hbm %s2082_s6, 32 }
 0x1a3   : > { %p1315_p9 = scmp.ne.s32.totalorder %s1922_s7, %s1314_s12  ;;  %p1319_p3 = scmp.lt.u32.totalorder %s1922_s7, %s2082_s6 }
 0x1a4   : > { %p1320_p6 = scmp.lt.u32.totalorder %s1318_s25, %s1314_s12  ;;  %p1322_p12 = scmp.lt.u32.totalorder %s1314_s12, %s1922_s7 }
 0x1a5   : > { %p1316_p11 = pnand %p1315_p9, %p2085_p13 }
 0x1a6   : > { %p1321_p8 = por %p1320_p6, %p1319_p3 }
 0x1a7   : > { %p1317_p0 = pneg %p1316_p11 }
 0x1a8   : > { %p1323_p2 = por %p1322_p12, %p1321_p8 }
 0x1aa   : > { %p1324_p4 = pnand %p1323_p2, %p1317_p0 }
 0x1ac   : > { %1327 = shalt.err (!%p1324_p4)
}
 0x1ad   : > { %1082 = dma.vmem_to_hbm [thread:$0]  (%p2085_p13), %s1924_s11, 16, %s1922_s7, %s1935_s3   ;;  %648 = vst.msk [vmem:[%s1733_s13] sm:$0x1] %vm591_vm5, %v647_v28 }
 0x1ae   : > { %s1328_s1 = scalar_lea.vmem %s1933_s16, 16  ;;  %s1469_s10 = smov [#allocation10]  }
 0x1af   : > { %p1329_p5 = scmp.ne.s32.totalorder %s1933_s16, %s1328_s1  ;;  %s1332_s15 = sshll.u32 %s1469_s10, 4  ;;  %s1333_s15 = int_to_ptr.vmem [resolvable:$false] %s1332_s15 }
 0x1b0   : > { %s1334_s30 = scalar_lea.vmem %s1333_s15, 32  ;;  %p1335_p7 = scmp.lt.s32.totalorder %s1933_s16, %s1333_s15 }
 0x1b1   : > { %p1330_p10 = pnand %p1329_p5, %p2085_p13  ;;  %p1336_p9 = scmp.lt.s32.totalorder %s1334_s30, %s1328_s1 }
 0x1b3   : > { %p1331_p1 = pneg %p1330_p10  ;;  %p1337_p11 = por %p1336_p9, %p1335_p7 }
 0x1b5   : > { %p1338_p0 = pnand %p1337_p11, %p1331_p1 }
 0x1b7   : > { %1341 = shalt.err (!%p1338_p0)
}
 0x1b8   : > { %s1342_s13 = scalar_lea.hbm %s1931_s14, 16  ;;  %s1346_s12 = scalar_lea.hbm %s2084_s4, 32 }
 0x1b9   : > { %p1343_p3 = scmp.ne.s32.totalorder %s1931_s14, %s1342_s13  ;;  %p1347_p12 = scmp.lt.u32.totalorder %s1931_s14, %s2084_s4 }
 0x1ba   : > { %p1348_p2 = scmp.lt.u32.totalorder %s1346_s12, %s1342_s13  ;;  %p1350_p5 = scmp.lt.u32.totalorder %s1342_s13, %s1931_s14 }
 0x1bb   : > { %p1344_p6 = pnand %p1343_p3, %p2085_p13 }
 0x1bc   : > { %p1349_p4 = por %p1348_p2, %p1347_p12 }
 0x1bd   : > { %p1345_p8 = pneg %p1344_p6 }
 0x1be   : > { %p1351_p10 = por %p1350_p5, %p1349_p4 }
 0x1c0   : > { %p1352_p1 = pnand %p1351_p10, %p1345_p8 }
 0x1c2   : > { %1355 = shalt.err (!%p1352_p1)
}
 0x1c3   : > { %1083 = dma.vmem_to_hbm [thread:$0]  (%p2085_p13), %s1933_s16, 16, %s1931_s14, %s1935_s3  }
 0x1c4 PF: > { %s2086_s25 = sld [smem:[#allocation15_spill]]  ;;  %s2087_s29 = sld [smem:[#allocation16_spill]] }
 0x1c5   : > { %p1108_p7 = scmp.ge.s32.totalorder %s1458_s28, 2 }
 0x1ca   : > { %s800_s24 = sand.u32 1, %s2086_s25   ;;  %p2088_p9 = scmp.ne.s32.totalorder %s2087_s29, 0 }
 0x1cb   : > { %s801_s1 = scalar_lea.sflag [#allocation4], %s800_s24 }
 0x1cc   : > { %p1096_p11 = pnand %p1108_p7, %p2088_p9 }
 0x1ce   : > { %1409 = dma.done.wait (!%p1096_p11), %s801_s1, 1024  }
 0x1cf   : > { %1411 = vsyncadd (!%p1096_p11), %s801_s1, 4294966272  ;;  %s2089_s10 = sadd.s32 4294967294, %s1458_s28   ;;  %s2090_s15 = sld [smem:[#allocation18_spill]] }
 0x1d0   : > { %s809_s30 = sand.u32 1, %s2089_s10  }
 0x1d1   : > { %s810_s17 = scalar_lea.sflag [#allocation9], %s809_s30 }
 0x1d5   : > { %p2091_p0 = scmp.ne.s32.totalorder %s2090_s15, 0 }
 0x1d7   : > { %p1099_p3 = pnand %p1108_p7, %p2091_p0 }
 0x1d9   : > { %1413 = dma.done.wait (!%p1099_p3), %s810_s17, 32  }
 0x1da   : > { %1415 = vsyncadd (!%p1099_p3), %s810_s17, 4294967264  ;;  %s26_s28 = sadd.s32 1, %s1458_s28   ;;  %s2092_s16 = smov %s1654_s21 }
 0x1db   : > { %p23_p13 = scmp.ge.s32.totalorder %s26_s28, 6   ;;  %s2093_s14 = sld [smem:[#allocation19_spill]] }
 0x1dc   : > { %s2094_s3 = sld [smem:[#allocation21_spill]]  ;;  %s2095_s18 = smov %s1422_s19 }
 0x1dd   : > { %s2096_s19 = smov %s1426_s20  ;;  %s2097_s20 = smov %s1651_s8 }
 0x1de   : > { %s2098_s21 = smov %s1434_s22  ;;  %s2099_s22 = smov %s1438_s23 }
 0x1df   : > { %s2100_s23 = smov %s2092_s16  ;;  %s2101_s24 = smov %s1450_s26 }
 0x1e0   : > { %s2102_s25 = smov %s1454_s27  ;;  %25 = sbr.rel (!%p23_p13) target bundleno = 17 (0x11), region = 120 }
 0x1e1   : > { %s2103_s26 = smov %s2093_s14 }
 0x1e2   : > { %s2104_s27 = smov %s2094_s3 }
 0x1e7   :  { %822 = vsyncpa [#allocation3], 1 }
 0x1e8   :  { %824 = vsyncpa [#allocation3 + $0x1], 1 }
 0x1e9   :  { %825 = vsyncpa [#allocation6], 1 }
 0x1ea   :  { %826 = vsyncpa [#allocation4], 1 }
 0x1eb   :  { %828 = vsyncpa [#allocation4 + $0x1], 1 }
 0x1ec   :  { %829 = vsyncpa [#allocation9], 1 }
 0x1ed   :  { %831 = vsyncpa [#allocation9 + $0x1], 1 }

</bundles_post_ra>
